<compile_context>
chip_gen: v6e
topology: v6e:2x2x1
jax: 0.10.0
libtpu: 0.0.40
codegen_flags: <defaults>
</compile_context>

<pallas_src>
import jax
import jax.numpy as jnp
from jax.experimental import pallas as pl
from jax.experimental.pallas import tpu as pltpu


def _round_up(x: int, m: int) -> int:
    return ((x + m - 1) // m) * m


def _cdiv(a: int, b: int) -> int:
    return (a + b - 1) // b


def _vmem_budget_bytes() -> int:
    """Scoped-VMEM limit: ~85% of physical VMEM, capped at 100 MiB.

    -> ~54 MiB on v7x (64 MiB physical), ~100 MiB on v5e/v6e (128 MiB)."""
    try:
        cap = pltpu.get_tpu_info().vmem_capacity_bytes
    except Exception:
        cap = 64 * 1024 * 1024  # conservative (v7x-sized) fallback
    return min(int(cap * 0.85), 100 * 1024 * 1024)


def _balanced_tile(dim: int, max_tile: int, align: int) -> int:
    """Tile (multiple of `align`, ~<= max_tile) minimizing padding waste."""
    n_chunks = max(1, _cdiv(dim, max_tile))
    return _round_up(_cdiv(dim, n_chunks), align)


def _noresblock_kernel(x_ref, w_ref, b_ref, o_ref):
    """One (tm, tn) output tile: SiLU(x_tile @ w_tile + b_tile).

    bf16 MXU operands (x cast down in-kernel), f32 accumulate / bias / SiLU.
    """
    h = jnp.dot(x_ref[...].astype(w_ref.dtype), w_ref[...],
                preferred_element_type=jnp.float32)
    h = h + b_ref[...]                       # bias kept in f32
    o_ref[...] = (h * jax.nn.sigmoid(h)).astype(o_ref.dtype)  # SiLU -> EUP


def init_noresblock_params(key, input_size, output_size, *,
                           weight_dtype=jnp.bfloat16,
                           zero_weight=True,
                           tn_max: int = 1024,
                           tm_max: int = 256,
                           k_align: int = 128):
    """noResBlock params, laid out ONCE for the kernel.

    * 'w' is PRE-TRANSPOSED to (d_in_pad, n_pad) (PyTorch linear.weight.T) and
      pre-padded/cast to bf16, so the forward pass streams it straight from
      HBM with zero per-call copies.
    * 'b' is a pre-padded (1, n_pad) f32 row.
    * tn only depends on output_size, so it is chosen here (balanced,
      lane-dense) and gated so a double-buffered working set fits VMEM.
    * linear.weight is zero-initialized (module-faithful); bias uses the
      PyTorch-Linear default uniform(-1/sqrt(fan_in), 1/sqrt(fan_in)).
    """
    d_in_pad = _round_up(input_size, k_align)

    tn = _balanced_tile(output_size, tn_max, 128)

    # Gate tn on the double-buffered working set (worst case: f32 x / out).
    budget = int(_vmem_budget_bytes() * 0.9)
    w_bytes = jnp.dtype(weight_dtype).itemsize

    def working_set(tn_):
        return 2 * (tm_max * d_in_pad * 4       # x tile      (f32 worst case)
                    + d_in_pad * tn_ * w_bytes  # weight tile (bf16)
                    + tn_ * 4                   # bias tile
                    + tm_max * tn_ * 4)         # output tile (f32 worst case)

    while tn > 128 and working_set(tn) > budget:
        tn -= 128
    n_pad = _round_up(output_size, tn)

    k_w, k_b = jax.random.split(key)
    bound = 1.0 / float(input_size) ** 0.5
    if zero_weight:  # matches torch.nn.init.zeros_(self.linear.weight)
        w = jnp.zeros((input_size, output_size), jnp.float32)
    else:            # non-zero weights so tests exercise the matmul path
        w = jax.random.uniform(k_w, (input_size, output_size), jnp.float32,
                               -bound, bound)
    b = jax.random.uniform(k_b, (output_size,), jnp.float32, -bound, bound)

    w_p = jnp.zeros((d_in_pad, n_pad), weight_dtype)
    w_p = w_p.at[:input_size, :output_size].set(w.astype(weight_dtype))
    b_p = jnp.zeros((1, n_pad), jnp.float32)
    b_p = b_p.at[0, :output_size].set(b)

    return {
        "w": w_p, "b": b_p,
        "d_in": input_size, "d_in_pad": d_in_pad,
        "d_out": output_size, "n_pad": n_pad,
        "tn": tn, "tm_max": tm_max,
    }


def noresblock_forward(x, params):
    """SiLU(x @ W + b) with a weight-resident, N-outer / M-inner tiled kernel."""
    B, d_in = x.shape
    assert d_in == params["d_in"], "x feature dim mismatch"
    w, bias = params["w"], params["b"]
    d_in_pad = params["d_in_pad"]
    d_out, n_pad, tn = params["d_out"], params["n_pad"], params["tn"]

    # Pad the contraction dim once per call (x is tiny vs. the weight stream).
    if d_in_pad != d_in:
        x = jnp.pad(x, ((0, 0), (0, d_in_pad - d_in)))

    # Sublane granularity follows the x dtype: 8 (f32) / 16 (bf16) / 32 (8-bit).
    sub = {4: 8, 2: 16, 1: 32}[x.dtype.itemsize]
    tm = _balanced_tile(B, params["tm_max"], sub)
    b_pad = _round_up(B, tm)

    n_m, n_n = b_pad // tm, n_pad // tn
    vmem_limit = _vmem_budget_bytes()

    x_p = x if b_pad == B else jnp.pad(x, ((0, b_pad - B), (0, 0)))

    # ---- tiny-shape fast path: single block, no grid-step overhead ---------
    if n_m * n_n <= 2:
        out = pl.pallas_call(
            _noresblock_kernel,
            out_shape=jax.ShapeDtypeStruct((b_pad, n_pad), x.dtype),
            in_specs=[pl.BlockSpec(memory_space=pltpu.MemorySpace.VMEM)] * 3,
            out_specs=pl.BlockSpec(memory_space=pltpu.MemorySpace.VMEM),
            compiler_params=pltpu.CompilerParams(vmem_limit_bytes=vmem_limit),
        )(x_p, w, bias)
        return out[:B, :d_out]

    # ---- pipelined grid path: N outer (weight stream / megacore), M inner --
    grid = (n_n, n_m)

    cost = pl.CostEstimate(
        flops=2 * b_pad * d_in_pad * n_pad,
        transcendentals=b_pad * n_pad,
        bytes_accessed=(x_p.size * x_p.dtype.itemsize * n_n   # x re-read per N block
                        + w.size * w.dtype.itemsize           # W streamed exactly once
                        + bias.size * bias.dtype.itemsize
                        + b_pad * n_pad * x.dtype.itemsize),
    )

    out = pl.pallas_call(
        _noresblock_kernel,
        out_shape=jax.ShapeDtypeStruct((b_pad, n_pad), x.dtype),
        grid_spec=pltpu.PrefetchScalarGridSpec(
            num_scalar_prefetch=0,
            grid=grid,
            in_specs=[
                # x tile changes with the inner index i only.
                pl.BlockSpec((tm, d_in_pad), lambda j, i: (i, 0)),
                # weight / bias tiles constant across the inner M sweep
                # -> no re-DMA; W read from HBM exactly once.
                pl.BlockSpec((d_in_pad, tn), lambda j, i: (0, j)),
                pl.BlockSpec((1, tn), lambda j, i: (0, j)),
            ],
            out_specs=pl.BlockSpec((tm, tn), lambda j, i: (i, j)),
        ),
        compiler_params=pltpu.CompilerParams(
            dimension_semantics=("parallel", "parallel"),
            vmem_limit_bytes=vmem_limit,
        ),
        cost_estimate=cost,
    )(x_p, w, bias)

    return out[:B, :d_out]


def noresblock_reference(x, params):
    """Pure-JAX reference (same bf16-operand / f32-accumulate numerics)."""
    d_in, d_out = params["d_in"], params["d_out"]
    w = params["w"][:d_in, :d_out]
    b = params["b"][0, :d_out]
    h = jnp.dot(x.astype(w.dtype), w, preferred_element_type=jnp.float32) + b
    return (h * jax.nn.sigmoid(h)).astype(x.dtype)


if __name__ == "__main__":
    key = jax.random.PRNGKey(0)
    k_x1, k_p1, k_x2, k_p2 = jax.random.split(key, 4)

    # Case 1: module-faithful init (zero weight) -> output = SiLU(bias);
    # small shapes take the single-block fast path.
    B, D_in, D_out = 8, 32, 64
    x1 = jax.random.normal(k_x1, (B, D_in), jnp.float32)
    p1 = init_noresblock_params(k_p1, D_in, D_out, zero_weight=True)
    y1 = jax.block_until_ready(noresblock_forward(x1, p1))
    r1 = noresblock_reference(x1, p1)
    assert y1.shape == (B, D_out)
    assert jnp.allclose(y1, r1, atol=1e-5, rtol=1e-5), "zero-weight case mismatch"

    # Case 2: non-zero weights, awkward sizes, small tile caps -> multi-tile
    # (N-outer, M-inner) pipelined grid path with row/col/K padding.
    B2, D_in2, D_out2 = 20, 48, 200
    x2 = jax.random.normal(k_x2, (B2, D_in2), jnp.float32)
    p2 = init_noresblock_params(k_p2, D_in2, D_out2, zero_weight=False,
                                tn_max=128, tm_max=16)
    y2 = jax.block_until_ready(noresblock_forward(x2, p2))
    r2 = noresblock_reference(x2, p2)
    assert y2.shape == (B2, D_out2)
    assert jnp.allclose(y2, r2, atol=2e-2, rtol=2e-2), "general case mismatch"

    print("KERNEL_OK")
</pallas_src>

<mosaic_0001>
module attributes {stable_mosaic.version = 11 : i64} {
  func.func @_noresblock_kernel(%arg0: memref<8x128xf32, #tpu.memory_space<vmem>>, %arg1: memref<128x128xbf16, #tpu.memory_space<vmem>>, %arg2: memref<1x128xf32, #tpu.memory_space<vmem>>, %arg3: memref<8x128xf32, #tpu.memory_space<vmem>>) attributes {dimension_semantics = [], scalar_prefetch = 0 : i64, scratch_operands = 0 : i64, tpu.core_type = #tpu.core_type<tc>} {
    %c0 = arith.constant 0 : index
    %c0_0 = arith.constant 0 : index
    %0 = vector.load %arg0[%c0, %c0_0] : memref<8x128xf32, #tpu.memory_space<vmem>>, vector<8x128xf32>
    %1 = arith.truncf %0 : vector<8x128xf32> to vector<8x128xbf16>
    %c0_1 = arith.constant 0 : index
    %c0_2 = arith.constant 0 : index
    %2 = vector.load %arg1[%c0_1, %c0_2] : memref<128x128xbf16, #tpu.memory_space<vmem>>, vector<128x128xbf16>
    %cst = arith.constant dense<0.000000e+00> : vector<8x128xf32>
    %3 = tpu.matmul %1, %2, %cst {dimension_numbers = #tpu.dot_dimension_numbers<[1], [0], [0], [1], [0, 0, 1, 1], [], []>} : vector<8x128xbf16>, vector<128x128xbf16>, vector<8x128xf32> -> vector<8x128xf32>
    %c0_3 = arith.constant 0 : index
    %c0_4 = arith.constant 0 : index
    %4 = vector.load %arg2[%c0_3, %c0_4] : memref<1x128xf32, #tpu.memory_space<vmem>>, vector<1x128xf32>
    %5 = vector.broadcast %4 : vector<1x128xf32> to vector<8x128xf32>
    %6 = arith.addf %3, %5 : vector<8x128xf32>
    %7 = arith.negf %6 : vector<8x128xf32>
    %8 = math.exp %7 : vector<8x128xf32>
    %cst_5 = arith.constant 1.000000e+00 : f32
    %9 = vector.broadcast %cst_5 : f32 to vector<8x128xf32>
    %10 = arith.addf %9, %8 : vector<8x128xf32>
    %11 = arith.divf %9, %10 : vector<8x128xf32>
    %12 = arith.mulf %6, %11 : vector<8x128xf32>
    %c0_6 = arith.constant 0 : index
    %c0_7 = arith.constant 0 : index
    %13 = vector.load %arg3[%c0_6, %c0_7] : memref<8x128xf32, #tpu.memory_space<vmem>>, vector<8x128xf32>
    tpu.vector_store %arg3[%c0_6, %c0_7], %12 {strides = array<i32>} : memref<8x128xf32, #tpu.memory_space<vmem>>, vector<8x128xf32>,
    return
  }
}

</mosaic_0001>

<bundles_post_ra>
// kernel: tpu_custom_call.1
= control target key start
LH: loop header
LB: loop body
LE: loop exit
PB: predicated region body
PF: predicated region fallthrough
CT: control target
= control target key end

     0   :  { %8 = vsyncpa [#allocation3], 0  ;;  %s342_s0 = inlined_call_operand.hbm [shape: f32[8,128], index: 0, kind: input, shape index: {}]   ;;  %s343_s1 = inlined_call_operand.hbm [shape: bf16[128,128], index: 1, kind: input, shape index: {}]   ;;  %s344_s2 = inlined_call_operand.vmem [shape: f32[1,128], index: 2, kind: input, shape index: {}]   ;;  %s345_s3 = inlined_call_operand.hbm [shape: f32[8,128], index: 3, kind: output, shape index: {}]  }
   0x1   :  { %9 = vsyncpa [#allocation6], 0 }
   0x2   :  { %10 = vsyncpa [#allocation4], 0  ;;  %s303_s12 = smov [#allocation2]   ;;  %s304_s14 = smov [#allocation5]  }
   0x3   :  { %s17_s13 = sshll.u32 %s303_s12, 4  ;;  %s26_s15 = sshll.u32 %s304_s14, 4  ;;  %s18_s13 = int_to_ptr.vmem [resolvable:$true] %s17_s13  ;;  %s27_s15 = int_to_ptr.vmem [resolvable:$true] %s26_s15 }
   0x4   :  { %s245_s16 = scalar_lea.vmem %s18_s13, 128  ;;  %p250_p1 = scmp.lt.s32.totalorder %s18_s13, %s18_s13 }
   0x5   :  { %p246_p0 = scmp.ne.s32.totalorder %s18_s13, %s245_s16  ;;  %p251_p2 = scmp.lt.s32.totalorder %s245_s16, %s245_s16 }
   0x7   :  { %p252_p3 = por %p251_p2, %p250_p1 }
   0x9   :  { %p253_p4 = pnand %p252_p3, %p246_p0 }
   0xb   :  { %256 = shalt.err (!%p253_p4)
}
   0xc   :  { %20 = dma.hbm_to_vmem [thread:$0]  %s342_s0, 128, %s18_s13, [#allocation3]  }
   0xd   :  { %s265_s19 = scalar_lea.vmem %s27_s15, 1024  ;;  %p270_p6 = scmp.lt.s32.totalorder %s27_s15, %s27_s15 }
   0xe   :  { %p266_p5 = scmp.ne.s32.totalorder %s27_s15, %s265_s19  ;;  %p271_p7 = scmp.lt.s32.totalorder %s265_s19, %s265_s19 }
  0x10   :  { %p272_p8 = por %p271_p7, %p270_p6 }
  0x12   :  { %p273_p9 = pnand %p272_p8, %p266_p5 }
  0x14   :  { %276 = shalt.err (!%p273_p9)
}
  0x15   :  { %s305_s20 = smov 64   ;;  %s306_s21 = smov 4  }
  0x16   :  { %32 = dma.hbm_to_vmem [thread:$0]  %s343_s1, 1024, %s27_s15, [#allocation6], %s305_s20, %s305_s20, %s306_s21  }
  0x17   :  { %297 = dma.done.wait [#allocation3], 128  }
  0x18   :  { %298 = vsyncadd [#allocation3], 4294967168 }
  0x19   :  { %299 = dma.done.wait [#allocation6], 1024  }
  0x1a   :  { %300 = vsyncadd [#allocation6], 4294966272  ;;  %v307_v0 = vmov 0.0   ;;  %vm308_vm0 = vmmov 0   ;;  %v225_v1 = vld [vmem:[#allocation5 + $0x38] sm:$0xff]   ;;  %v226_v2 = vld [vmem:[#allocation5 + $0x30] sm:$0xff]  }
  0x1b   :  { %198 = vmatprep.subr.bf16.mxu0 %v307_v0  ;;  %214 = vmatprep.mubr.msk.bf16.mxu0 %vm308_vm0, %v307_v0  ;;  %v227_v3 = vld [vmem:[#allocation5 + $0x28] sm:$0xff]   ;;  %v228_v4 = vld [vmem:[#allocation5 + $0x20] sm:$0xff]   ;;  %v229_v5 = vld [vmem:[#allocation5 + $0x18] sm:$0xff]   ;;  %s309_s24 = smov [#allocation7]  }
  0x1c   :  { %199 = vmatpush3.bf16.msra.mxu0 %v225_v1  ;;  %v230_v6 = vld [vmem:[#allocation5 + $0x10] sm:$0xff]   ;;  %v231_v7 = vld [vmem:[#allocation5 + $0x8] sm:$0xff]   ;;  %v232_v8 = vld [vmem:[#allocation5] sm:$0xff]   ;;  %s169_s25 = sshll.u32 %s309_s24, 4  ;;  %s170_s25 = int_to_ptr.vmem [resolvable:$true] %s169_s25 }
  0x1d   :  { %200 = vmatprep.subr.bf16.mxu0 %v307_v0  ;;  %v42_v9 = vld [vmem:[#allocation2] sm:$0xff]  ;;  %s277_s26 = scalar_lea.vmem %s170_s25, 128  ;;  %p282_p11 = scmp.lt.s32.totalorder %s170_s25, %s170_s25 }
  0x1e   :  { %v43_v10 = vpack.c.bf16 %v42_v9, %v42_v9  ;;  %v179_v11 = vld [vmem:[%s344_s2] ss:$0 sm:$0xff]  ;;  %p278_p10 = scmp.ne.s32.totalorder %s170_s25, %s277_s26  ;;  %p283_p12 = scmp.lt.s32.totalorder %s277_s26, %s277_s26 }
  0x20   :  { %201 = vmatpush3.bf16.msra.mxu0 %v226_v2  ;;  %p284_p13 = por %p283_p12, %p282_p11 }
  0x21   :  { %202 = vmatprep.subr.bf16.mxu0 %v307_v0 }
  0x22   :  { %p285_p0 = pnand %p284_p13, %p278_p10 }
  0x24   :  { %203 = vmatpush3.bf16.msra.mxu0 %v227_v3 }
  0x25   :  { %204 = vmatprep.subr.bf16.mxu0 %v307_v0 }
  0x28   :  { %205 = vmatpush3.bf16.msra.mxu0 %v228_v4 }
  0x29   :  { %206 = vmatprep.subr.bf16.mxu0 %v307_v0 }
  0x2c   :  { %207 = vmatpush3.bf16.msra.mxu0 %v229_v5 }
  0x2d   :  { %208 = vmatprep.subr.bf16.mxu0 %v307_v0 }
  0x30   :  { %209 = vmatpush3.bf16.msra.mxu0 %v230_v6 }
  0x31   :  { %210 = vmatprep.subr.bf16.mxu0 %v307_v0 }
  0x34   :  { %211 = vmatpush3.bf16.msra.mxu0 %v231_v7 }
  0x35   :  { %212 = vmatprep.subr.bf16.mxu0 %v307_v0 }
  0x38   :  { %213 = vmatpush3.bf16.msra.mxu0 %v232_v8 }
  0x3b   :  { %215 = vmatmul.mubr.bf16.vlgmr.msra.gmra.mxu0 %v43_v10 }
  0xfb   :  { %v149_v12 = vpop.f32.mrf.mxu0 }
  0xfc   :  { %v150_v13 = vadd.f32 %v179_v11, %v149_v12 }
  0xfd   :  { %v216_v14 = vpop.f32.mrf.mxu0 }
  0xfe   :  { %v188_v15 = vmul.f32 -1.442695, %v150_v13 }
  0xff   :  { %v152_v16 = vpop.f32.mrf.mxu0 }
 0x100   :  { %233 = vpow2.f32 %v188_v15 }
 0x101   :  { %v217_v17 = vpop.f32.mrf.mxu0 }
 0x10d   :  { %v234_v18 = vpop.eup %233 }
 0x10e   :  { %v158_v19 = vadd.f32 1.0, %v234_v18 }
 0x110   :  { %235 = vrcp.f32 %v158_v19 }
 0x11d   :  { %v236_v20 = vpop.eup %235 }
 0x11e   :  { %v161_v21 = vmul.f32 %v236_v20, %v150_v13 }
 0x120   :  { %162 = vst [vmem:[#allocation7] sm:$0xff] %v161_v21 }
 0x121   :  { %288 = shalt.err (!%p285_p0)
}
 0x122   :  { %172 = dma.vmem_to_hbm [thread:$0]  %s170_s25, 128, %s345_s3, [#allocation4]  }
 0x123   :  { %301 = dma.done.wait [#allocation4], 128  }
 0x124   :  { %302 = vsyncadd [#allocation4], 4294967168 }
 0x125   :  { %176 = vsyncpa [#allocation3], 1 }
 0x126   :  { %177 = vsyncpa [#allocation6], 1 }
 0x127   :  { %178 = vsyncpa [#allocation4], 1 }

</bundles_post_ra>
